<compile_context>
chip_gen: v5e
topology: v5e:2x2
jax: 0.10.0
libtpu: 0.0.40
codegen_flags: <defaults>
</compile_context>

<pallas_src>
import math
import functools

import jax
import jax.numpy as jnp
from jax.experimental import pallas as pl
from jax.experimental.pallas import tpu as pltpu

_NEG_BIG = -1e30  # finite "-inf": masked tiles stay NaN-free


# ---------------------------------------------------------------------------
# Pass 1: K / V projection (hoisted out of the attention kv loop).
# ---------------------------------------------------------------------------
def _kv_proj_kernel(x_ref, wk_ref, wv_ref, k_ref, v_ref):
    xt = x_ref[0]                                                   # (tp, d_in)
    k_ref[0] = jnp.dot(xt, wk_ref[...],
                       preferred_element_type=jnp.float32).astype(k_ref.dtype)
    v_ref[0] = jnp.dot(xt, wv_ref[...],
                       preferred_element_type=jnp.float32).astype(v_ref.dtype)


def _project_kv(x, wk, wv, *, block_t):
    B, T, d_in = x.shape
    d_out = wk.shape[1]
    return pl.pallas_call(
        _kv_proj_kernel,
        out_shape=(jax.ShapeDtypeStruct((B, T, d_out), x.dtype),
                   jax.ShapeDtypeStruct((B, T, d_out), x.dtype)),
        grid=(B, T // block_t),
        in_specs=[
            pl.BlockSpec((1, block_t, d_in), lambda b, t: (b, t, 0)),
            pl.BlockSpec((d_in, d_out), lambda b, t: (0, 0)),
            pl.BlockSpec((d_in, d_out), lambda b, t: (0, 0)),
        ],
        out_specs=(
            pl.BlockSpec((1, block_t, d_out), lambda b, t: (b, t, 0)),
            pl.BlockSpec((1, block_t, d_out), lambda b, t: (b, t, 0)),
        ),
        compiler_params=pltpu.CompilerParams(
            dimension_semantics=("parallel", "parallel")),
    )(x, wk, wv)


# ---------------------------------------------------------------------------
# Pass 2: causal flash attention + output projection over a triangular
# (q-tile, kv-tile) pair grid (scalar-prefetched schedule).
# ---------------------------------------------------------------------------
def _flash_mha_kernel(qi_map_ref, ki_map_ref,                       # prefetch
                      xq_ref, k_ref, v_ref, wq_ref, wo_ref, bo_ref,  # inputs
                      o_ref,                                         # output
                      q_sc, m_sc, l_sc, acc_sc,                      # scratch
                      *, n_heads, head_dim, block_q, block_k,
                      approx_reciprocal):
    pair = pl.program_id(1)
    qi = qi_map_ref[pair]
    ki = ki_map_ref[pair]

    # ---- first kv tile of this q tile: project (pre-scaled) Q once, head-split
    #      it once, and reset the online-softmax state.
    @pl.when(ki == 0)
    def _init():
        q = jnp.dot(xq_ref[0], wq_ref[...],
                    preferred_element_type=jnp.float32)              # (tq, d_out)
        q3 = jnp.stack(
            [q[:, h * head_dim:(h + 1) * head_dim] for h in range(n_heads)],
            axis=0)                                                   # (H, tq, hd)
        q_sc[...] = q3.astype(q_sc.dtype)
        m_sc[...] = jnp.full_like(m_sc, _NEG_BIG)
        l_sc[...] = jnp.zeros_like(l_sc)
        acc_sc[...] = jnp.zeros_like(acc_sc)

    def _attend(apply_mask):
        # Lane-dense K/V tiles straight from the (tk, d_out) block; one
        # register-level head split per tile (no scratch staging stores).
        k_d = k_ref[0]
        v_d = v_ref[0]
        k3 = jnp.stack(
            [k_d[:, h * head_dim:(h + 1) * head_dim] for h in range(n_heads)],
            axis=0)                                                   # (H, tk, hd)
        v3 = jnp.stack(
            [v_d[:, h * head_dim:(h + 1) * head_dim] for h in range(n_heads)],
            axis=0)

        # Head-batched scores (Q already carries the 1/sqrt(T) scale).
        s = jnp.einsum('hqd,hkd->hqk', q_sc[...], k3,
                       preferred_element_type=jnp.float32)            # (H, tq, tk)

        if apply_mask:  # only for tiles intersecting the diagonal
            row = qi * block_q + jax.lax.broadcasted_iota(
                jnp.int32, (block_q, block_k), 0)
            col = ki * block_k + jax.lax.broadcasted_iota(
                jnp.int32, (block_q, block_k), 1)
            s = s + jnp.where(col > row,
                              jnp.float32(_NEG_BIG), jnp.float32(0.0))

        # Online softmax update (f32).
        m_prev = m_sc[...]
        m_new = jnp.maximum(m_prev, jnp.max(s, axis=-1, keepdims=True))
        alpha = jnp.exp(m_prev - m_new)
        p = jnp.exp(s - m_new)
        l_sc[...] = alpha * l_sc[...] + jnp.sum(p, axis=-1, keepdims=True)
        acc_sc[...] = alpha * acc_sc[...] + jnp.einsum(
            'hqk,hkd->hqd', p.astype(v3.dtype), v3,
            preferred_element_type=jnp.float32)
        m_sc[...] = m_new

    # Diagonal vs interior split: interior tiles skip all mask math.
    needs_mask = (ki * block_k + (block_k - 1)) > (qi * block_q)

    @pl.when(needs_mask)
    def _diag_tile():
        _attend(True)

    @pl.when(jnp.logical_not(needs_mask))
    def _interior_tile():
        _attend(False)

    # ---- last kv tile for this q tile: normalize once, project, write out.
    # (ki is the last tile iff the next kv tile would start past the last row.)
    is_last = (ki + 1) * block_k >= (qi + 1) * block_q

    @pl.when(is_last)
    def _finalize():
        inv_l = pl.reciprocal(l_sc[...], approx=approx_reciprocal)     # (H, tq, 1)
        ctx = acc_sc[...] * inv_l                                      # (H, tq, hd)
        ctx2 = jnp.concatenate([ctx[h] for h in range(n_heads)], axis=-1)
        out = jnp.dot(ctx2.astype(wo_ref.dtype), wo_ref[...],
                      preferred_element_type=jnp.float32)
        out = out + bo_ref[0].astype(jnp.float32)
        o_ref[0] = out.astype(o_ref.dtype)


def multi_head_attention(x, wq, wk, wv, wo, bo, *, n_heads,
                         block_q=None, block_k=None, block_proj=None,
                         approx_reciprocal=True, vmem_limit_bytes=None):
    """Forward pass of the MultiHeadAttention module (eval mode)."""
    B, T, d_in = x.shape
    d_out = wq.shape[1]
    assert d_out % n_heads == 0
    head_dim = d_out // n_heads

    tq = block_q if block_q is not None else min(T, 256)
    tk = block_k if block_k is not None else min(T, 256)
    tp = block_proj if block_proj is not None else min(T, 256)
    assert T % tq == 0 and T % tk == 0 and T % tp == 0
    assert (tq % 8 == 0 or tq == T) and (tk % 8 == 0 or tk == T)

    # Reference semantics: softmax(scores / sqrt(num_tokens)).  Fold the scale
    # into W_query once in the wrapper (removes a per-kv-step (H,tq,tk) multiply).
    inv_scale = 1.0 / math.sqrt(float(T))
    wq_scaled = (wq.astype(jnp.float32) * inv_scale).astype(wq.dtype)

    # Pass 1: K / V projected once per token (not once per (q-tile, kv-tile)).
    k_proj, v_proj = _project_kv(x, wk, wv, block_t=tp)

    # Triangular (q-tile, kv-tile) schedule.  ki ascends within each qi group so
    # ki == 0 is always the group's first step (init) and every row sees at least
    # one unmasked key there -> the finite -1e30 mask never produces NaNs.
    nq, nk = T // tq, T // tk
    qi_list, ki_list = [], []
    for qi in range(nq):
        last_ki = min((qi * tq + tq - 1) // tk, nk - 1)
        for ki in range(last_ki + 1):
            qi_list.append(qi)
            ki_list.append(ki)
    qi_map = jnp.asarray(qi_list, dtype=jnp.int32)
    ki_map = jnp.asarray(ki_list, dtype=jnp.int32)
    num_pairs = len(qi_list)

    compute_dtype = x.dtype   # bf16 inputs keep the MXU on its fast path

    kernel = functools.partial(
        _flash_mha_kernel,
        n_heads=n_heads, head_dim=head_dim,
        block_q=tq, block_k=tk,
        approx_reciprocal=approx_reciprocal)

    return pl.pallas_call(
        kernel,
        out_shape=jax.ShapeDtypeStruct((B, T, d_out), x.dtype),
        grid_spec=pltpu.PrefetchScalarGridSpec(
            num_scalar_prefetch=2,
            grid=(B, num_pairs),
            in_specs=[
                # x for the per-q-tile Q projection (re-DMA'd only when qi changes)
                pl.BlockSpec((1, tq, d_in), lambda b, p, qm, km: (b, qm[p], 0)),
                # pre-projected K / V tiles (lane-dense last dim = d_out)
                pl.BlockSpec((1, tk, d_out), lambda b, p, qm, km: (b, km[p], 0)),
                pl.BlockSpec((1, tk, d_out), lambda b, p, qm, km: (b, km[p], 0)),
                # resident weights / bias (grid-invariant, small)
                pl.BlockSpec((d_in, d_out), lambda b, p, qm, km: (0, 0)),
                pl.BlockSpec((d_out, d_out), lambda b, p, qm, km: (0, 0)),
                pl.BlockSpec((1, d_out), lambda b, p, qm, km: (0, 0)),
            ],
            out_specs=pl.BlockSpec((1, tq, d_out),
                                   lambda b, p, qm, km: (b, qm[p], 0)),
            scratch_shapes=[
                pltpu.VMEM((n_heads, tq, head_dim), compute_dtype),  # cached Q
                pltpu.VMEM((n_heads, tq, 1), jnp.float32),           # running max
                pltpu.VMEM((n_heads, tq, 1), jnp.float32),           # running sum
                pltpu.VMEM((n_heads, tq, head_dim), jnp.float32),    # P@V acc
            ],
        ),
        compiler_params=pltpu.CompilerParams(
            dimension_semantics=("parallel", "arbitrary"),
            vmem_limit_bytes=vmem_limit_bytes,
        ),
    )(qi_map, ki_map, x, k_proj, v_proj, wq_scaled, wo, bo)


def _reference(x, wq, wk, wv, wo, bo, *, n_heads):
    """Pure-JAX replica of the PyTorch forward (eval mode) for checking."""
    B, T, d_in = x.shape
    d_out = wq.shape[1]
    hd = d_out // n_heads
    q = x @ wq
    k = x @ wk
    v = x @ wv
    q = q.reshape(B, T, n_heads, hd).transpose(0, 2, 1, 3)
    k = k.reshape(B, T, n_heads, hd).transpose(0, 2, 1, 3)
    v = v.reshape(B, T, n_heads, hd).transpose(0, 2, 1, 3)
    scores = jnp.einsum('bhqd,bhkd->bhqk', q, k)
    mask = jnp.triu(jnp.ones((T, T), dtype=bool), k=1)
    scores = jnp.where(mask, -jnp.inf, scores)
    w = jax.nn.softmax(scores / (T ** 0.5), axis=-1)
    ctx = jnp.einsum('bhqk,bhkd->bhqd', w, v).transpose(0, 2, 1, 3).reshape(B, T, d_out)
    return ctx @ wo + bo


if __name__ == "__main__":
    # Small shapes consistent with the module; T=128 with 32-wide tiles gives a
    # triangular pair grid of 10 steps per batch (up to 4 kv steps per q tile),
    # exercising init / interior / diagonal / finalize paths.
    B, T, d_in = 2, 128, 32
    d_out, n_heads = 32, 4

    key = jax.random.PRNGKey(0)
    kx, kq, kk, kv, ko, kb = jax.random.split(key, 6)

    def init_w(k, fan_in, fan_out):
        bound = 1.0 / math.sqrt(fan_in)
        return jax.random.uniform(k, (fan_in, fan_out), jnp.float32, -bound, bound)

    x = jax.random.normal(kx, (B, T, d_in), jnp.float32)
    wq = init_w(kq, d_in, d_out)
    wk = init_w(kk, d_in, d_out)
    wv = init_w(kv, d_in, d_out)
    wo = init_w(ko, d_out, d_out)
    bo = jax.random.uniform(kb, (1, d_out), jnp.float32,
                            -1.0 / math.sqrt(d_out), 1.0 / math.sqrt(d_out))

    ref = _reference(x, wq, wk, wv, wo, bo, n_heads=n_heads)

    # 1) f32 path, exact normalization: tight check vs the PyTorch-equivalent ref.
    out = multi_head_attention(x, wq, wk, wv, wo, bo, n_heads=n_heads,
                               block_q=32, block_k=32, approx_reciprocal=False)
    out = jax.block_until_ready(out)
    assert out.shape == (B, T, d_out)
    assert jnp.allclose(out, ref, atol=2e-5, rtol=2e-5), "f32 mismatch vs reference"

    # 2) bf16 inputs/weights + bf16 MXU operands + EUP approximate reciprocal
    #    (recommended fast path); f32 accumulation keeps bf16-level accuracy.
    cast = lambda a: a.astype(jnp.bfloat16)
    out_bf = multi_head_attention(cast(x), cast(wq), cast(wk), cast(wv),
                                  cast(wo), cast(bo), n_heads=n_heads,
                                  block_q=32, block_k=32, approx_reciprocal=True)
    out_bf = jax.block_until_ready(out_bf)
    assert jnp.allclose(out_bf.astype(jnp.float32), ref, atol=5e-2, rtol=5e-2), \
        "bf16 mismatch vs reference"

    print("KERNEL_OK")
</pallas_src>

<mosaic_0001>
module attributes {stable_mosaic.version = 11 : i64} {
  func.func @_kv_proj_kernel(%arg0: i32, %arg1: i32, %arg2: memref<1x128x32xf32, #tpu.memory_space<vmem>>, %arg3: memref<32x32xf32, #tpu.memory_space<vmem>>, %arg4: memref<32x32xf32, #tpu.memory_space<vmem>>, %arg5: memref<1x128x32xf32, #tpu.memory_space<vmem>>, %arg6: memref<1x128x32xf32, #tpu.memory_space<vmem>>) attributes {dimension_semantics = [#tpu.dimension_semantics<parallel>, #tpu.dimension_semantics<parallel>], iteration_bounds = array<i64: 2, 1>, scalar_prefetch = 0 : i64, scratch_operands = 0 : i64, tpu.core_type = #tpu.core_type<tc>, window_params = [{transform_indices = @transform_0, window_bounds = array<i64: 1, 128, 32>}, {pipeline_mode = #tpu.pipeline_mode<synchronous>, transform_indices = @transform_1, window_bounds = array<i64: 32, 32>}, {pipeline_mode = #tpu.pipeline_mode<synchronous>, transform_indices = @transform_2, window_bounds = array<i64: 32, 32>}, {transform_indices = @transform_3, window_bounds = array<i64: 1, 128, 32>}, {transform_indices = @transform_4, window_bounds = array<i64: 1, 128, 32>}]} {
    %c0 = arith.constant 0 : index
    %c0_0 = arith.constant 0 : index
    %c0_1 = arith.constant 0 : index
    %0 = vector.load %arg2[%c0, %c0_0, %c0_1] : memref<1x128x32xf32, #tpu.memory_space<vmem>>, vector<1x128x32xf32>
    %1 = vector.shape_cast %0 : vector<1x128x32xf32> to vector<128x32xf32>
    %c0_2 = arith.constant 0 : index
    %c0_3 = arith.constant 0 : index
    %2 = vector.load %arg3[%c0_2, %c0_3] : memref<32x32xf32, #tpu.memory_space<vmem>>, vector<32x32xf32>
    %cst = arith.constant dense<0.000000e+00> : vector<128x32xf32>
    %3 = tpu.matmul %1, %2, %cst {dimension_numbers = #tpu.dot_dimension_numbers<[1], [0], [0], [1], [0, 0, 1, 1], [], []>} : vector<128x32xf32>, vector<32x32xf32>, vector<128x32xf32> -> vector<128x32xf32>
    %c0_4 = arith.constant 0 : index
    %c0_5 = arith.constant 0 : index
    %c0_6 = arith.constant 0 : index
    %4 = vector.load %arg5[%c0_4, %c0_5, %c0_6] : memref<1x128x32xf32, #tpu.memory_space<vmem>>, vector<1x128x32xf32>
    %5 = vector.shape_cast %4 : vector<1x128x32xf32> to vector<128x32xf32>
    %6 = vector.shape_cast %3 : vector<128x32xf32> to vector<1x128x32xf32>
    tpu.vector_store %arg5[%c0_4, %c0_5, %c0_6], %6 {strides = array<i32>} : memref<1x128x32xf32, #tpu.memory_space<vmem>>, vector<1x128x32xf32>,
    %c0_7 = arith.constant 0 : index
    %c0_8 = arith.constant 0 : index
    %7 = vector.load %arg4[%c0_7, %c0_8] : memref<32x32xf32, #tpu.memory_space<vmem>>, vector<32x32xf32>
    %cst_9 = arith.constant dense<0.000000e+00> : vector<128x32xf32>
    %8 = tpu.matmul %1, %7, %cst_9 {dimension_numbers = #tpu.dot_dimension_numbers<[1], [0], [0], [1], [0, 0, 1, 1], [], []>} : vector<128x32xf32>, vector<32x32xf32>, vector<128x32xf32> -> vector<128x32xf32>
    %c0_10 = arith.constant 0 : index
    %c0_11 = arith.constant 0 : index
    %c0_12 = arith.constant 0 : index
    %9 = vector.load %arg6[%c0_10, %c0_11, %c0_12] : memref<1x128x32xf32, #tpu.memory_space<vmem>>, vector<1x128x32xf32>
    %10 = vector.shape_cast %9 : vector<1x128x32xf32> to vector<128x32xf32>
    %11 = vector.shape_cast %8 : vector<128x32xf32> to vector<1x128x32xf32>
    tpu.vector_store %arg6[%c0_10, %c0_11, %c0_12], %11 {strides = array<i32>} : memref<1x128x32xf32, #tpu.memory_space<vmem>>, vector<1x128x32xf32>,
    return
  }
  func.func @transform_0(%arg0: i32, %arg1: i32) -> (i32, i32, i32) {
    %c0_i32 = arith.constant 0 : i32
    %c0_i32_0 = arith.constant 0 : i32
    return %arg0, %arg1, %c0_i32 : i32, i32, i32
  }
  func.func @transform_1(%arg0: i32, %arg1: i32) -> (i32, i32) {
    %c0_i32 = arith.constant 0 : i32
    %c0_i32_0 = arith.constant 0 : i32
    %c0_i32_1 = arith.constant 0 : i32
    return %c0_i32, %c0_i32_0 : i32, i32
  }
  func.func @transform_2(%arg0: i32, %arg1: i32) -> (i32, i32) {
    %c0_i32 = arith.constant 0 : i32
    %c0_i32_0 = arith.constant 0 : i32
    %c0_i32_1 = arith.constant 0 : i32
    return %c0_i32, %c0_i32_0 : i32, i32
  }
  func.func @transform_3(%arg0: i32, %arg1: i32) -> (i32, i32, i32) {
    %c0_i32 = arith.constant 0 : i32
    %c0_i32_0 = arith.constant 0 : i32
    return %arg0, %arg1, %c0_i32 : i32, i32, i32
  }
  func.func @transform_4(%arg0: i32, %arg1: i32) -> (i32, i32, i32) {
    %c0_i32 = arith.constant 0 : i32
    %c0_i32_0 = arith.constant 0 : i32
    return %arg0, %arg1, %c0_i32 : i32, i32, i32
  }
}

</mosaic_0001>

<bundles_post_ra>
// kernel: tpu_custom_call.1
= control target key start
LH: loop header
LB: loop body
LE: loop exit
PB: predicated region body
PF: predicated region fallthrough
CT: control target
= control target key end

     0   :  { %s762_s15 = smov 0   ;;  %s764_s16 = smov 0   ;;  %s945_s0 = inlined_call_operand.vmem [shape: f32[2,128,32], index: 0, kind: input, shape index: {}]   ;;  %s946_s1 = inlined_call_operand.vmem [shape: f32[32,32], index: 1, kind: input, shape index: {}]   ;;  %s947_s2 = inlined_call_operand.vmem [shape: f32[32,32], index: 2, kind: input, shape index: {}]   ;;  %s948_s3 = inlined_call_operand.vmem [shape: f32[2,128,32], index: 3, kind: output, shape index: {0}]   ;;  %s949_s4 = inlined_call_operand.vmem [shape: f32[2,128,32], index: 4, kind: output, shape index: {1}]  }
   0x1   :  { %s766_s17 = smov 0  }
   0x2 LB: > { %s27_s18 = sadd.s32 1, %s731_s16  ;;  %p637_p0 = scmp.ge.s32.totalorder %s735_s17, 1  ;;  %s735_s17 = sphi %s766_s17, %s15_s17   ;;  %s731_s16 = sphi %s764_s16, %s951_s16   ;;  %s727_s15 = sphi %s762_s15, %s950_s15  }
   0x3   : > { %p29_p1 = scmp.ge.s32.totalorder %s27_s18, 2  ;;  %p188_p2 = scmp.lt.s32.totalorder %s735_s17, 3 }
   0x5   : > { %s953_s18 = smov (%p29_p1, %s27_s18), 0  ;;  %p189_p3 = pnand %p637_p0, %p188_p2 }
   0x6   : > { %p232_p4 = scmp.lt.s32.totalorder (!%p189_p3), %s727_s15, 1 }
   0x7   : > { %192 = sbr.rel (%p189_p3) target bundleno = 210 (0xd2), region = 32 }
   0xc   : > { %v280_v0 = vld [vmem:[%s946_s1 + $0x18] sm:$0xff]  ;;  %v279_v2 = vld [vmem:[%s946_s1 + $0x10] sm:$0xff]  ;;  %v278_v4 = vld [vmem:[%s946_s1 + $0x8] sm:$0xff]  ;;  %s955_s15 = smov (!%p232_p4, %s727_s15), 1  ;;  %vm281_vm0 = vcmask 261120  }
   0xd   : > { %v414_v1 = vld [vmem:[%s947_s2 + $0x18] sm:$0xff]  ;;  %681 = vmatpush.msra.mxu2 %v280_v0  ;;  %v413_v3 = vld [vmem:[%s947_s2 + $0x10] sm:$0xff]  ;;  %v412_v5 = vld [vmem:[%s947_s2 + $0x8] sm:$0xff]  ;;  %342 = vmatpush.msra.mxu0 %v280_v0  ;;  %s804_s9 = sshll.u32 %s955_s15, 7 }
   0xe   : > { %685 = vmatpush.msra.mxu3 %v414_v1  ;;  %427 = vmatpush.msra.mxu1 %v414_v1  ;;  %v277_v6 = vld [vmem:[%s946_s1] sm:$0xff]  ;;  %s810_s12 = scalar_lea.vmem %s945_s0, %s804_s9  ;;  %s864_s15 = scalar_lea.vmem %s948_s3, %s804_s9 }
   0xf   : > { %682 = vmatpush.msra.mxu2 %v279_v2  ;;  %v411_v7 = vld [vmem:[%s947_s2] sm:$0xff]  ;;  %343 = vmatpush.msra.mxu0 %v279_v2  ;;  %v270_v10 = vld [vmem:[%s810_s12 + $0x48] sm:$0xff]  ;;  %v271_v12 = vld [vmem:[%s810_s12 + $0x50] sm:$0xff]  ;;  %s870_s21 = scalar_lea.vmem %s949_s4, %s804_s9 }
  0x10   : > { %686 = vmatpush.msra.mxu3 %v413_v3  ;;  %428 = vmatpush.msra.mxu1 %v413_v3  ;;  %v269_v8 = vld [vmem:[%s810_s12 + $0x40] sm:$0xff]  ;;  %v262_v11 = vld [vmem:[%s810_s12 + $0x8] sm:$0xff]  ;;  %v263_v13 = vld [vmem:[%s810_s12 + $0x10] sm:$0xff] }
  0x11   : > { %683 = vmatpush.msra.mxu2 %v278_v4  ;;  %344 = vmatpush.msra.mxu0 %v278_v4  ;;  %v261_v9 = vld [vmem:[%s810_s12] sm:$0xff]  ;;  %v272_v14 = vld [vmem:[%s810_s12 + $0x58] sm:$0xff]  ;;  %v274_v18 = vld [vmem:[%s810_s12 + $0x68] sm:$0xff] }
  0x12   : > { %687 = vmatpush.msra.mxu3 %v412_v5  ;;  %429 = vmatpush.msra.mxu1 %v412_v5  ;;  %v264_v15 = vld [vmem:[%s810_s12 + $0x18] sm:$0xff]  ;;  %v273_v16 = vld [vmem:[%s810_s12 + $0x60] sm:$0xff]  ;;  %v266_v19 = vld [vmem:[%s810_s12 + $0x28] sm:$0xff] }
  0x13   : > { %684 = vmatpush.msra.mxu2 %v277_v6  ;;  %345 = vmatpush.msra.mxu0 %v277_v6  ;;  %v265_v17 = vld [vmem:[%s810_s12 + $0x20] sm:$0xff]  ;;  %v275_v20 = vld [vmem:[%s810_s12 + $0x70] sm:$0xff]  ;;  %v276_v22 = vld [vmem:[%s810_s12 + $0x78] sm:$0xff] }
  0x14   : > { %688 = vmatpush.msra.mxu3 %v411_v7  ;;  %652 = vmatmul.msk.f32.vlgmr.msra.gmra.mxu2 %vm281_vm0, %v269_v8  ;;  %v267_v21 = vld [vmem:[%s810_s12 + $0x30] sm:$0xff]  ;;  %v268_v23 = vld [vmem:[%s810_s12 + $0x38] sm:$0xff] }
  0x15   : > { %668 = vmatmul.msk.f32.vlgmr.msra.gmra.mxu3 %vm281_vm0, %v269_v8  ;;  %430 = vmatpush.msra.mxu1 %v411_v7 }
  0x16   : > { %644 = vmatmul.msk.f32.vlgmr.msra.gmra.mxu0 %vm281_vm0, %v261_v9  ;;  %660 = vmatmul.msk.f32.vlgmr.msra.gmra.mxu1 %vm281_vm0, %v261_v9 }
  0x1c   : > { %653 = vmatmul.msk.f32.gmra.mxu2 %vm281_vm0, %v270_v10 }
  0x1d   : > { %669 = vmatmul.msk.f32.gmra.mxu3 %vm281_vm0, %v270_v10 }
  0x1e   : > { %645 = vmatmul.msk.f32.gmra.mxu0 %vm281_vm0, %v262_v11  ;;  %661 = vmatmul.msk.f32.gmra.mxu1 %vm281_vm0, %v262_v11 }
  0x24   : > { %654 = vmatmul.msk.f32.gmra.mxu2 %vm281_vm0, %v271_v12 }
  0x25   : > { %670 = vmatmul.msk.f32.gmra.mxu3 %vm281_vm0, %v271_v12 }
  0x26   : > { %646 = vmatmul.msk.f32.gmra.mxu0 %vm281_vm0, %v263_v13  ;;  %662 = vmatmul.msk.f32.gmra.mxu1 %vm281_vm0, %v263_v13 }
  0x2c   : > { %655 = vmatmul.msk.f32.gmra.mxu2 %vm281_vm0, %v272_v14 }
  0x2d   : > { %671 = vmatmul.msk.f32.gmra.mxu3 %vm281_vm0, %v272_v14 }
  0x2e   : > { %647 = vmatmul.msk.f32.gmra.mxu0 %vm281_vm0, %v264_v15  ;;  %663 = vmatmul.msk.f32.gmra.mxu1 %vm281_vm0, %v264_v15 }
  0x34   : > { %656 = vmatmul.msk.f32.gmra.mxu2 %vm281_vm0, %v273_v16 }
  0x35   : > { %672 = vmatmul.msk.f32.gmra.mxu3 %vm281_vm0, %v273_v16 }
  0x36   : > { %648 = vmatmul.msk.f32.gmra.mxu0 %vm281_vm0, %v265_v17  ;;  %664 = vmatmul.msk.f32.gmra.mxu1 %vm281_vm0, %v265_v17 }
  0x3c   : > { %657 = vmatmul.msk.f32.gmra.mxu2 %vm281_vm0, %v274_v18 }
  0x3d   : > { %673 = vmatmul.msk.f32.gmra.mxu3 %vm281_vm0, %v274_v18 }
  0x3e   : > { %649 = vmatmul.msk.f32.gmra.mxu0 %vm281_vm0, %v266_v19  ;;  %665 = vmatmul.msk.f32.gmra.mxu1 %vm281_vm0, %v266_v19 }
  0x44   : > { %658 = vmatmul.msk.f32.gmra.mxu2 %vm281_vm0, %v275_v20 }
  0x45   : > { %674 = vmatmul.msk.f32.gmra.mxu3 %vm281_vm0, %v275_v20 }
  0x46   : > { %650 = vmatmul.msk.f32.gmra.mxu0 %vm281_vm0, %v267_v21  ;;  %666 = vmatmul.msk.f32.gmra.mxu1 %vm281_vm0, %v267_v21 }
  0x4c   : > { %659 = vmatmul.msk.f32.gmra.mxu2 %vm281_vm0, %v276_v22 }
  0x4d   : > { %675 = vmatmul.msk.f32.gmra.mxu3 %vm281_vm0, %v276_v22 }
  0x4e   : > { %651 = vmatmul.msk.f32.gmra.mxu0 %vm281_vm0, %v268_v23  ;;  %667 = vmatmul.msk.f32.gmra.mxu1 %vm281_vm0, %v268_v23 }
  0x93   : > { %v347_v24 = vpop.f32.mrf.mxu0  ;;  %v432_v25 = vpop.f32.mrf.mxu1 }
  0x94   : > { %395 = vst.msk [vmem:[%s864_s15] sm:$0xff] %vm281_vm0, %v347_v24 }
  0x95   : > { %480 = vst.msk [vmem:[%s870_s21] sm:$0xff] %vm281_vm0, %v432_v25 }
  0x97   : > { %v371_v26 = vpop.f32.mrf.mxu2 }
  0x98   : > { %v456_v27 = vpop.f32.mrf.mxu3  ;;  %403 = vst.msk [vmem:[%s864_s15 + $0x40] sm:$0xff] %vm281_vm0, %v371_v26 }
  0x99   : > { %488 = vst.msk [vmem:[%s870_s21 + $0x40] sm:$0xff] %vm281_vm0, %v456_v27 }
  0x9b   : > { %v350_v28 = vpop.f32.mrf.mxu0  ;;  %v435_v29 = vpop.f32.mrf.mxu1 }
  0x9c   : > { %396 = vst.msk [vmem:[%s864_s15 + $0x8] sm:$0xff] %vm281_vm0, %v350_v28 }
  0x9d   : > { %481 = vst.msk [vmem:[%s870_s21 + $0x8] sm:$0xff] %vm281_vm0, %v435_v29 }
  0x9f   : > { %v374_v30 = vpop.f32.mrf.mxu2 }
  0xa0   : > { %v459_v31 = vpop.f32.mrf.mxu3  ;;  %404 = vst.msk [vmem:[%s864_s15 + $0x48] sm:$0xff] %vm281_vm0, %v374_v30 }
  0xa1   : > { %489 = vst.msk [vmem:[%s870_s21 + $0x48] sm:$0xff] %vm281_vm0, %v459_v31 }
  0xa3   : > { %v353_v32 = vpop.f32.mrf.mxu0  ;;  %v438_v33 = vpop.f32.mrf.mxu1 }
  0xa4   : > { %397 = vst.msk [vmem:[%s864_s15 + $0x10] sm:$0xff] %vm281_vm0, %v353_v32 }
  0xa5   : > { %482 = vst.msk [vmem:[%s870_s21 + $0x10] sm:$0xff] %vm281_vm0, %v438_v33 }
  0xa7   : > { %v377_v34 = vpop.f32.mrf.mxu2 }
  0xa8   : > { %v462_v35 = vpop.f32.mrf.mxu3  ;;  %405 = vst.msk [vmem:[%s864_s15 + $0x50] sm:$0xff] %vm281_vm0, %v377_v34 }
  0xa9   : > { %490 = vst.msk [vmem:[%s870_s21 + $0x50] sm:$0xff] %vm281_vm0, %v462_v35 }
  0xab   : > { %v356_v36 = vpop.f32.mrf.mxu0  ;;  %v441_v37 = vpop.f32.mrf.mxu1 }
  0xac   : > { %398 = vst.msk [vmem:[%s864_s15 + $0x18] sm:$0xff] %vm281_vm0, %v356_v36 }
  0xad   : > { %483 = vst.msk [vmem:[%s870_s21 + $0x18] sm:$0xff] %vm281_vm0, %v441_v37 }
  0xaf   : > { %v380_v38 = vpop.f32.mrf.mxu2 }
  0xb0   : > { %v465_v39 = vpop.f32.mrf.mxu3  ;;  %406 = vst.msk [vmem:[%s864_s15 + $0x58] sm:$0xff] %vm281_vm0, %v380_v38 }
  0xb1   : > { %491 = vst.msk [vmem:[%s870_s21 + $0x58] sm:$0xff] %vm281_vm0, %v465_v39 }
  0xb3   : > { %v359_v40 = vpop.f32.mrf.mxu0  ;;  %v444_v41 = vpop.f32.mrf.mxu1 }
  0xb4   : > { %399 = vst.msk [vmem:[%s864_s15 + $0x20] sm:$0xff] %vm281_vm0, %v359_v40 }
  0xb5   : > { %484 = vst.msk [vmem:[%s870_s21 + $0x20] sm:$0xff] %vm281_vm0, %v444_v41 }
  0xb7   : > { %v383_v42 = vpop.f32.mrf.mxu2 }
  0xb8   : > { %v468_v43 = vpop.f32.mrf.mxu3  ;;  %407 = vst.msk [vmem:[%s864_s15 + $0x60] sm:$0xff] %vm281_vm0, %v383_v42 }
  0xb9   : > { %492 = vst.msk [vmem:[%s870_s21 + $0x60] sm:$0xff] %vm281_vm0, %v468_v43 }
  0xbb   : > { %v362_v44 = vpop.f32.mrf.mxu0  ;;  %v447_v45 = vpop.f32.mrf.mxu1 }
  0xbc   : > { %400 = vst.msk [vmem:[%s864_s15 + $0x28] sm:$0xff] %vm281_vm0, %v362_v44 }
  0xbd   : > { %485 = vst.msk [vmem:[%s870_s21 + $0x28] sm:$0xff] %vm281_vm0, %v447_v45 }
  0xbf   : > { %v386_v46 = vpop.f32.mrf.mxu2 }
  0xc0   : > { %v471_v47 = vpop.f32.mrf.mxu3  ;;  %408 = vst.msk [vmem:[%s864_s15 + $0x68] sm:$0xff] %vm281_vm0, %v386_v46 }
  0xc1   : > { %493 = vst.msk [vmem:[%s870_s21 + $0x68] sm:$0xff] %vm281_vm0, %v471_v47 }
  0xc3   : > { %v365_v48 = vpop.f32.mrf.mxu0  ;;  %v450_v49 = vpop.f32.mrf.mxu1 }
  0xc4   : > { %401 = vst.msk [vmem:[%s864_s15 + $0x30] sm:$0xff] %vm281_vm0, %v365_v48 }
  0xc5   : > { %486 = vst.msk [vmem:[%s870_s21 + $0x30] sm:$0xff] %vm281_vm0, %v450_v49 }
  0xc7   : > { %v389_v50 = vpop.f32.mrf.mxu2 }
  0xc8   : > { %v474_v51 = vpop.f32.mrf.mxu3  ;;  %409 = vst.msk [vmem:[%s864_s15 + $0x70] sm:$0xff] %vm281_vm0, %v389_v50 }
  0xc9   : > { %494 = vst.msk [vmem:[%s870_s21 + $0x70] sm:$0xff] %vm281_vm0, %v474_v51 }
  0xcb   : > { %v368_v52 = vpop.f32.mrf.mxu0  ;;  %v453_v53 = vpop.f32.mrf.mxu1 }
  0xcc   : > { %402 = vst.msk [vmem:[%s864_s15 + $0x38] sm:$0xff] %vm281_vm0, %v368_v52 }
  0xcd   : > { %487 = vst.msk [vmem:[%s870_s21 + $0x38] sm:$0xff] %vm281_vm0, %v453_v53 }
  0xcf   : > { %v392_v54 = vpop.f32.mrf.mxu2 }
  0xd0   : > { %v477_v55 = vpop.f32.mrf.mxu3  ;;  %410 = vst.msk [vmem:[%s864_s15 + $0x78] sm:$0xff] %vm281_vm0, %v392_v54 }
  0xd1   : > { %495 = vst.msk [vmem:[%s870_s21 + $0x78] sm:$0xff] %vm281_vm0, %v477_v55 }
  0xd2 PF: > { %s15_s17 = sadd.s32 1, %s735_s17   ;;  %s950_s15 = smov %s731_s16 }
  0xd3   : > { %p12_p5 = scmp.ge.s32.totalorder %s15_s17, 4   ;;  %s951_s16 = smov %s953_s18 }
  0xd5   :  { %14 = sbr.rel (!%p12_p5) target bundleno = 2 (0x2), region = 74 }

</bundles_post_ra>
